<compile_context>
chip_gen: v6e
topology: v6e:2x2x1
jax: 0.10.0
libtpu: 0.0.40
codegen_flags: <defaults>
</compile_context>

<pallas_src>
import functools

import jax
import jax.numpy as jnp
from jax.experimental import pallas as pl
from jax.experimental.pallas import tpu as pltpu


def attention_kernel(x_ref, gamma_ref, beta_ref, wqkv_ref, wout_ref, bout_ref,
                     o_ref, *, heads, dim_head, eps):
    f32 = jnp.float32
    bf16 = jnp.bfloat16
    N = x_ref.shape[0]

    x = x_ref[...].astype(f32)                               # (N, D)

    # ---- LayerNorm over last dim (biased variance = PyTorch), f32 math ----
    mean = jnp.mean(x, axis=-1, keepdims=True)
    xc = x - mean
    var = jnp.mean(xc * xc, axis=-1, keepdims=True)
    xn = xc * jax.lax.rsqrt(var + eps)
    xn = xn * gamma_ref[...] + beta_ref[...]                 # (N, D)

    # ---- Fused QKV projection: one full-width MXU matmul (bf16 in, f32 acc) --
    qkv = jnp.dot(xn.astype(bf16), wqkv_ref[...],
                  preferred_element_type=f32)                # (N, 3*inner)

    # Move the head axis to the leading (batch) position once, instead of
    # slicing 16-lane chunks per head:  (N, 3*inner) -> (3*H, N, dh).
    qkv = jnp.swapaxes(qkv.reshape(N, 3 * heads, dim_head), 0, 1)

    scale = dim_head ** -0.5
    q = (qkv[:heads] * scale).astype(bf16)                   # (H, N, dh)
    k = qkv[heads:2 * heads].astype(bf16)                    # (H, N, dh)
    v = qkv[2 * heads:].astype(bf16)                         # (H, N, dh)

    # ---- Scores: head-batched, contract dh of both operands (no k.T) --------
    dots = jnp.einsum('hnd,hmd->hnm', q, k,
                      preferred_element_type=f32)            # (H, N, N)

    # ---- Softmax over keys (f32); dropout(p=0.0) -> identity ----------------
    m = jnp.max(dots, axis=-1, keepdims=True)
    p = jnp.exp(dots - m)
    s = jnp.sum(p, axis=-1, keepdims=True)
    p = p * pl.reciprocal(s, approx=True)

    # ---- Attention output per head ------------------------------------------
    out_h = jnp.einsum('hnm,hmd->hnd', p.astype(bf16), v,
                       preferred_element_type=f32)           # (H, N, dh)

    # ---- Output projection: per-head matmul, reduce over heads --------------
    # (avoids the (N, inner) concat and narrow-lane scratch stores entirely)
    proj = jnp.einsum('hnd,hdo->hno', out_h.astype(bf16), wout_ref[...],
                      preferred_element_type=f32)            # (H, N, D)
    out = jnp.sum(proj, axis=0) + bout_ref[...]              # (N, D)

    o_ref[...] = out.astype(o_ref.dtype)


def attention_forward(x, gamma, beta, w_qkv, w_out, b_out, *, heads, dim_head,
                      eps=1e-5):
    """x: (B, N, D); params in PyTorch nn.Linear layout:
       w_qkv: (3*inner, D), w_out: (D, inner), b_out/gamma/beta: (D,)."""
    B, N, D = x.shape
    inner = heads * dim_head
    assert w_qkv.shape == (3 * inner, D)
    assert w_out.shape == (D, inner)

    # One-time re-layout outside the kernel; weights shipped as bf16.
    w_qkv_r = jnp.transpose(w_qkv).astype(jnp.bfloat16)                 # (D, 3*inner)
    w_out_r = jnp.transpose(w_out).reshape(heads, dim_head, D).astype(jnp.bfloat16)
    gamma_r = gamma.reshape(1, D).astype(jnp.float32)
    beta_r = beta.reshape(1, D).astype(jnp.float32)
    b_out_r = b_out.reshape(1, D).astype(jnp.float32)

    kernel = functools.partial(attention_kernel, heads=heads,
                               dim_head=dim_head, eps=eps)

    return pl.pallas_call(
        kernel,
        out_shape=jax.ShapeDtypeStruct((B, N, D), x.dtype),
        grid_spec=pltpu.PrefetchScalarGridSpec(
            num_scalar_prefetch=0,
            grid=(B,),
            in_specs=[
                pl.BlockSpec((pl.Squeezed(), N, D), lambda b: (b, 0, 0)),   # x
                pl.BlockSpec((1, D), lambda b: (0, 0)),                     # gamma
                pl.BlockSpec((1, D), lambda b: (0, 0)),                     # beta
                pl.BlockSpec((D, 3 * inner), lambda b: (0, 0)),             # w_qkv (bf16)
                pl.BlockSpec((heads, dim_head, D), lambda b: (0, 0, 0)),    # w_out (bf16)
                pl.BlockSpec((1, D), lambda b: (0, 0)),                     # b_out
            ],
            out_specs=pl.BlockSpec((pl.Squeezed(), N, D), lambda b: (b, 0, 0)),
        ),
        compiler_params=pltpu.CompilerParams(
            dimension_semantics=("parallel",)),
    )(x, gamma_r, beta_r, w_qkv_r, w_out_r, b_out_r)


def reference_forward(x, gamma, beta, w_qkv, w_out, b_out, *, heads, dim_head,
                      eps=1e-5):
    # pure-JAX (f32) reference of the PyTorch forward
    xf = x.astype(jnp.float32)
    mean = jnp.mean(xf, axis=-1, keepdims=True)
    var = jnp.mean((xf - mean) ** 2, axis=-1, keepdims=True)
    xn = (xf - mean) * jax.lax.rsqrt(var + eps) * gamma + beta
    qkv = xn @ w_qkv.T
    q, k, v = jnp.split(qkv, 3, axis=-1)

    def to_heads(t):
        B, N, _ = t.shape
        return t.reshape(B, N, heads, dim_head).transpose(0, 2, 1, 3)

    q, k, v = map(to_heads, (q, k, v))
    dots = jnp.einsum("bhnd,bhmd->bhnm", q, k) * (dim_head ** -0.5)
    attn = jax.nn.softmax(dots, axis=-1)
    out = jnp.einsum("bhnm,bhmd->bhnd", attn, v)
    B, _, N, _ = out.shape
    out = out.transpose(0, 2, 1, 3).reshape(B, N, heads * dim_head)
    return out @ w_out.T + b_out


if __name__ == "__main__":
    # Small shapes consistent with the module.  (Production shapes should keep
    # D and inner as multiples of 128 for lane-dense stores.)
    B, N, D = 2, 8, 32
    heads, dim_head = 4, 16
    inner = heads * dim_head

    key = jax.random.PRNGKey(0)
    kx, kq, ko, kb = jax.random.split(key, 4)

    x = jax.random.normal(kx, (B, N, D), dtype=jnp.float32)

    # Deterministic synthetic parameters in PyTorch nn.Linear layout (out, in).
    gamma = jnp.ones((D,), jnp.float32)
    beta = jnp.zeros((D,), jnp.float32)
    w_qkv = jax.random.normal(kq, (3 * inner, D), jnp.float32) * 0.05
    w_out = jax.random.normal(ko, (D, inner), jnp.float32) * 0.05
    b_out = jax.random.normal(kb, (D,), jnp.float32) * 0.01

    out = attention_forward(x, gamma, beta, w_qkv, w_out, b_out,
                            heads=heads, dim_head=dim_head)
    out = jax.block_until_ready(out)

    ref = reference_forward(x, gamma, beta, w_qkv, w_out, b_out,
                            heads=heads, dim_head=dim_head)
    assert out.shape == (B, N, D)
    # bf16 MXU operands + approx reciprocal -> slightly looser tolerance than f32.
    max_err = jnp.max(jnp.abs(out - ref))
    assert jnp.allclose(out, ref, atol=2e-2, rtol=2e-2), f"max err {max_err}"

    print("KERNEL_OK")
</pallas_src>

<mosaic_0001>
module attributes {stable_mosaic.version = 11 : i64} {
  func.func @attention_kernel(%arg0: i32, %arg1: memref<1x8x32xf32, #tpu.memory_space<vmem>>, %arg2: memref<1x32xf32, #tpu.memory_space<vmem>>, %arg3: memref<1x32xf32, #tpu.memory_space<vmem>>, %arg4: memref<32x192xbf16, #tpu.memory_space<vmem>>, %arg5: memref<4x16x32xbf16, #tpu.memory_space<vmem>>, %arg6: memref<1x32xf32, #tpu.memory_space<vmem>>, %arg7: memref<1x8x32xf32, #tpu.memory_space<vmem>>) attributes {dimension_semantics = [#tpu.dimension_semantics<parallel>], iteration_bounds = array<i64: 2>, scalar_prefetch = 0 : i64, scratch_operands = 0 : i64, tpu.core_type = #tpu.core_type<tc>, window_params = [{transform_indices = @transform_0, window_bounds = array<i64: 1, 8, 32>}, {pipeline_mode = #tpu.pipeline_mode<synchronous>, transform_indices = @transform_1, window_bounds = array<i64: 1, 32>}, {pipeline_mode = #tpu.pipeline_mode<synchronous>, transform_indices = @transform_2, window_bounds = array<i64: 1, 32>}, {pipeline_mode = #tpu.pipeline_mode<synchronous>, transform_indices = @transform_3, window_bounds = array<i64: 32, 192>}, {pipeline_mode = #tpu.pipeline_mode<synchronous>, transform_indices = @transform_4, window_bounds = array<i64: 4, 16, 32>}, {pipeline_mode = #tpu.pipeline_mode<synchronous>, transform_indices = @transform_5, window_bounds = array<i64: 1, 32>}, {transform_indices = @transform_6, window_bounds = array<i64: 1, 8, 32>}]} {
    %c0 = arith.constant 0 : index
    %c0_0 = arith.constant 0 : index
    %c0_1 = arith.constant 0 : index
    %0 = vector.load %arg1[%c0, %c0_0, %c0_1] : memref<1x8x32xf32, #tpu.memory_space<vmem>>, vector<1x8x32xf32>
    %1 = vector.shape_cast %0 : vector<1x8x32xf32> to vector<8x32xf32>
    %cst = arith.constant dense<0.000000e+00> : vector<8xf32>
    %2 = vector.multi_reduction <add>, %1, %cst [1] : vector<8x32xf32> to vector<8xf32>
    %3 = vector.shape_cast %2 : vector<8xf32> to vector<8x1xf32>
    %cst_2 = arith.constant 3.200000e+01 : f32
    %4 = vector.broadcast %cst_2 : f32 to vector<8x1xf32>
    %5 = arith.divf %3, %4 : vector<8x1xf32>
    %6 = vector.broadcast %5 : vector<8x1xf32> to vector<8x32xf32>
    %7 = arith.subf %1, %6 : vector<8x32xf32>
    %8 = arith.mulf %7, %7 : vector<8x32xf32>
    %cst_3 = arith.constant dense<0.000000e+00> : vector<8xf32>
    %9 = vector.multi_reduction <add>, %8, %cst_3 [1] : vector<8x32xf32> to vector<8xf32>
    %10 = vector.shape_cast %9 : vector<8xf32> to vector<8x1xf32>
    %cst_4 = arith.constant 3.200000e+01 : f32
    %11 = vector.broadcast %cst_4 : f32 to vector<8x1xf32>
    %12 = arith.divf %10, %11 : vector<8x1xf32>
    %cst_5 = arith.constant 9.99999974E-6 : f32
    %13 = vector.broadcast %cst_5 : f32 to vector<8x1xf32>
    %14 = arith.addf %12, %13 : vector<8x1xf32>
    %15 = math.rsqrt %14 : vector<8x1xf32>
    %16 = vector.broadcast %15 : vector<8x1xf32> to vector<8x32xf32>
    %17 = arith.mulf %7, %16 : vector<8x32xf32>
    %c0_6 = arith.constant 0 : index
    %c0_7 = arith.constant 0 : index
    %18 = vector.load %arg2[%c0_6, %c0_7] : memref<1x32xf32, #tpu.memory_space<vmem>>, vector<1x32xf32>
    %19 = vector.broadcast %18 : vector<1x32xf32> to vector<8x32xf32>
    %20 = arith.mulf %17, %19 : vector<8x32xf32>
    %c0_8 = arith.constant 0 : index
    %c0_9 = arith.constant 0 : index
    %21 = vector.load %arg3[%c0_8, %c0_9] : memref<1x32xf32, #tpu.memory_space<vmem>>, vector<1x32xf32>
    %22 = vector.broadcast %21 : vector<1x32xf32> to vector<8x32xf32>
    %23 = arith.addf %20, %22 : vector<8x32xf32>
    %24 = arith.truncf %23 : vector<8x32xf32> to vector<8x32xbf16>
    %c0_10 = arith.constant 0 : index
    %c0_11 = arith.constant 0 : index
    %25 = vector.load %arg4[%c0_10, %c0_11] : memref<32x192xbf16, #tpu.memory_space<vmem>>, vector<32x192xbf16>
    %cst_12 = arith.constant dense<0.000000e+00> : vector<8x192xf32>
    %26 = tpu.matmul %24, %25, %cst_12 {dimension_numbers = #tpu.dot_dimension_numbers<[1], [0], [0], [1], [0, 0, 1, 1], [], []>} : vector<8x32xbf16>, vector<32x192xbf16>, vector<8x192xf32> -> vector<8x192xf32>
    %27 = vector.shape_cast %26 : vector<8x192xf32> to vector<8x12x16xf32>
    %28 = tpu.transpose %27, [1, 0, 2] : vector<8x12x16xf32> -> vector<12x8x16xf32>
    %29 = vector.extract_strided_slice %28 {offsets = [0, 0, 0], sizes = [4, 8, 16], strides = [1, 1, 1]} : vector<12x8x16xf32> to vector<4x8x16xf32>
    %cst_13 = arith.constant 2.500000e-01 : f32
    %30 = vector.broadcast %cst_13 : f32 to vector<4x8x16xf32>
    %31 = arith.mulf %29, %30 : vector<4x8x16xf32>
    %32 = arith.truncf %31 : vector<4x8x16xf32> to vector<4x8x16xbf16>
    %33 = vector.extract_strided_slice %28 {offsets = [4, 0, 0], sizes = [4, 8, 16], strides = [1, 1, 1]} : vector<12x8x16xf32> to vector<4x8x16xf32>
    %34 = arith.truncf %33 : vector<4x8x16xf32> to vector<4x8x16xbf16>
    %35 = vector.extract_strided_slice %28 {offsets = [8, 0, 0], sizes = [4, 8, 16], strides = [1, 1, 1]} : vector<12x8x16xf32> to vector<4x8x16xf32>
    %36 = arith.truncf %35 : vector<4x8x16xf32> to vector<4x8x16xbf16>
    "tpu.trace_start"() <{level = 10 : i32, message = "hnd,hmd->hnm"}> : () -> ()
    %cst_14 = arith.constant dense<0.000000e+00> : vector<4x8x8xf32>
    %37 = tpu.matmul %32, %34, %cst_14 {dimension_numbers = #tpu.dot_dimension_numbers<[2], [2], [1], [1], [0, 0, 0, 1, 1, 1], [0], [0]>} : vector<4x8x16xbf16>, vector<4x8x16xbf16>, vector<4x8x8xf32> -> vector<4x8x8xf32>
    "tpu.trace_stop"() : () -> ()
    %cst_15 = arith.constant dense<0xFF800000> : vector<4x8xf32>
    %38 = vector.multi_reduction <maximumf>, %37, %cst_15 [2] : vector<4x8x8xf32> to vector<4x8xf32>
    %39 = vector.shape_cast %38 : vector<4x8xf32> to vector<4x8x1xf32>
    %40 = vector.broadcast %39 : vector<4x8x1xf32> to vector<4x8x8xf32>
    %41 = arith.subf %37, %40 : vector<4x8x8xf32>
    %42 = math.exp %41 : vector<4x8x8xf32>
    %cst_16 = arith.constant dense<0.000000e+00> : vector<4x8xf32>
    %43 = vector.multi_reduction <add>, %42, %cst_16 [2] : vector<4x8x8xf32> to vector<4x8xf32>
    %44 = vector.shape_cast %43 : vector<4x8xf32> to vector<4x8x1xf32>
    %45 = tpu.reciprocal %44 {approx = true} : vector<4x8x1xf32> -> vector<4x8x1xf32>
    %46 = vector.broadcast %45 : vector<4x8x1xf32> to vector<4x8x8xf32>
    %47 = arith.mulf %42, %46 : vector<4x8x8xf32>
    %48 = arith.truncf %47 : vector<4x8x8xf32> to vector<4x8x8xbf16>
    "tpu.trace_start"() <{level = 10 : i32, message = "hnm,hmd->hnd"}> : () -> ()
    %cst_17 = arith.constant dense<0.000000e+00> : vector<4x8x16xf32>
    %49 = tpu.matmul %48, %36, %cst_17 {dimension_numbers = #tpu.dot_dimension_numbers<[2], [1], [1], [2], [0, 0, 0, 1, 1, 2], [0], [0]>} : vector<4x8x8xbf16>, vector<4x8x16xbf16>, vector<4x8x16xf32> -> vector<4x8x16xf32>
    "tpu.trace_stop"() : () -> ()
    %50 = arith.truncf %49 : vector<4x8x16xf32> to vector<4x8x16xbf16>
    %c0_18 = arith.constant 0 : index
    %c0_19 = arith.constant 0 : index
    %c0_20 = arith.constant 0 : index
    %51 = vector.load %arg5[%c0_18, %c0_19, %c0_20] : memref<4x16x32xbf16, #tpu.memory_space<vmem>>, vector<4x16x32xbf16>
    "tpu.trace_start"() <{level = 10 : i32, message = "hnd,hdo->hno"}> : () -> ()
    %cst_21 = arith.constant dense<0.000000e+00> : vector<4x8x32xf32>
    %52 = tpu.matmul %50, %51, %cst_21 {dimension_numbers = #tpu.dot_dimension_numbers<[2], [1], [1], [2], [0, 0, 0, 1, 1, 2], [0], [0]>} : vector<4x8x16xbf16>, vector<4x16x32xbf16>, vector<4x8x32xf32> -> vector<4x8x32xf32>
    "tpu.trace_stop"() : () -> ()
    %cst_22 = arith.constant dense<0.000000e+00> : vector<8x32xf32>
    %53 = vector.multi_reduction <add>, %52, %cst_22 [0] : vector<4x8x32xf32> to vector<8x32xf32>
    %c0_23 = arith.constant 0 : index
    %c0_24 = arith.constant 0 : index
    %54 = vector.load %arg6[%c0_23, %c0_24] : memref<1x32xf32, #tpu.memory_space<vmem>>, vector<1x32xf32>
    %55 = vector.broadcast %54 : vector<1x32xf32> to vector<8x32xf32>
    %56 = arith.addf %53, %55 : vector<8x32xf32>
    %c0_25 = arith.constant 0 : index
    %c0_26 = arith.constant 0 : index
    %c0_27 = arith.constant 0 : index
    %57 = vector.load %arg7[%c0_25, %c0_26, %c0_27] : memref<1x8x32xf32, #tpu.memory_space<vmem>>, vector<1x8x32xf32>
    %58 = vector.shape_cast %57 : vector<1x8x32xf32> to vector<8x32xf32>
    %59 = vector.shape_cast %56 : vector<8x32xf32> to vector<1x8x32xf32>
    tpu.vector_store %arg7[%c0_25, %c0_26, %c0_27], %59 {strides = array<i32>} : memref<1x8x32xf32, #tpu.memory_space<vmem>>, vector<1x8x32xf32>,
    return
  }
  func.func @transform_0(%arg0: i32) -> (i32, i32, i32) {
    %c0_i32 = arith.constant 0 : i32
    %c0_i32_0 = arith.constant 0 : i32
    %c0_i32_1 = arith.constant 0 : i32
    return %arg0, %c0_i32, %c0_i32_0 : i32, i32, i32
  }
  func.func @transform_1(%arg0: i32) -> (i32, i32) {
    %c0_i32 = arith.constant 0 : i32
    %c0_i32_0 = arith.constant 0 : i32
    %c0_i32_1 = arith.constant 0 : i32
    return %c0_i32, %c0_i32_0 : i32, i32
  }
  func.func @transform_2(%arg0: i32) -> (i32, i32) {
    %c0_i32 = arith.constant 0 : i32
    %c0_i32_0 = arith.constant 0 : i32
    %c0_i32_1 = arith.constant 0 : i32
    return %c0_i32, %c0_i32_0 : i32, i32
  }
  func.func @transform_3(%arg0: i32) -> (i32, i32) {
    %c0_i32 = arith.constant 0 : i32
    %c0_i32_0 = arith.constant 0 : i32
    %c0_i32_1 = arith.constant 0 : i32
    return %c0_i32, %c0_i32_0 : i32, i32
  }
  func.func @transform_4(%arg0: i32) -> (i32, i32, i32) {
    %c0_i32 = arith.constant 0 : i32
    %c0_i32_0 = arith.constant 0 : i32
    %c0_i32_1 = arith.constant 0 : i32
    %c0_i32_2 = arith.constant 0 : i32
    return %c0_i32, %c0_i32_0, %c0_i32_1 : i32, i32, i32
  }
  func.func @transform_5(%arg0: i32) -> (i32, i32) {
    %c0_i32 = arith.constant 0 : i32
    %c0_i32_0 = arith.constant 0 : i32
    %c0_i32_1 = arith.constant 0 : i32
    return %c0_i32, %c0_i32_0 : i32, i32
  }
  func.func @transform_6(%arg0: i32) -> (i32, i32, i32) {
    %c0_i32 = arith.constant 0 : i32
    %c0_i32_0 = arith.constant 0 : i32
    %c0_i32_1 = arith.constant 0 : i32
    return %arg0, %c0_i32, %c0_i32_0 : i32, i32, i32
  }
}

</mosaic_0001>

<bundles_post_ra>
// kernel: tpu_custom_call.1
= control target key start
LH: loop header
LB: loop body
LE: loop exit
PB: predicated region body
PF: predicated region fallthrough
CT: control target
= control target key end

     0   :  { %s2410_s0 = inlined_call_operand.hbm [shape: f32[2,8,32], index: 0, kind: input, shape index: {}]   ;;  %s2411_s1 = inlined_call_operand.vmem [shape: f32[1,32], index: 1, kind: input, shape index: {}]   ;;  %s2412_s2 = inlined_call_operand.vmem [shape: f32[1,32], index: 2, kind: input, shape index: {}]   ;;  %s2413_s3 = inlined_call_operand.hbm [shape: bf16[32,192], index: 3, kind: input, shape index: {}]   ;;  %s2414_s4 = inlined_call_operand.hbm [shape: bf16[4,16,32], index: 4, kind: input, shape index: {}]   ;;  %s2415_s5 = inlined_call_operand.vmem [shape: f32[1,32], index: 5, kind: input, shape index: {}]   ;;  %s2416_s6 = inlined_call_operand.hbm [shape: f32[2,8,32], index: 6, kind: output, shape index: {}]  }
   0x1   :  { %2421 = sst [smem:[#allocation12_spill]] %s2413_s3 }
   0x2   :  { %11 = vsyncpa [#allocation3], 0 }
   0x3   :  { %13 = vsyncpa [#allocation3 + $0x1], 0 }
   0x4   :  { %14 = vsyncpa [#allocation6], 0 }
   0x5   :  { %15 = vsyncpa [#allocation4], 0 }
   0x6   :  { %17 = vsyncpa [#allocation4 + $0x1], 0  ;;  %s2062_s21 = smov 0   ;;  %s2064_s22 = smov 0  }
   0x7   :  { %s2066_s23 = smov 0   ;;  %s2068_s24 = smov 0  }
   0x8 LB: > { %s2083_s25 = sadd.s32 4294967295, %s2005_s24   ;;  %s1600_s26 = sadd.s32 4294967294, %s2005_s24   ;;  %s2005_s24 = sphi %s2068_s24, %s2440_s24   ;;  %s2001_s23 = sphi %s2066_s23, %s2439_s23   ;;  %s1997_s22 = sphi %s2064_s22, %s2438_s22   ;;  %s1993_s21 = sphi %s2062_s21, %s2437_s21  }
   0x9   : > { %p43_p0 = scmp.ne.s32.totalorder %s1997_s22, %s1993_s21  ;;  %p2417_p1 = scmp.eq.s32.totalorder %s2083_s25, 0 }
   0xa   : > { %p178_p3 = scmp.eq.s32.totalorder %s1600_s26, 1  ;;  %p1601_p5 = scmp.ge.s32.totalorder %s2005_s24, 1 }
   0xb   : > { %p2092_p4 = por %p2417_p1, %p43_p0  ;;  %p185_p7 = scmp.lt.s32.totalorder %s2005_s24, 3 }
   0xc   : > { %p2097_p6 = por %p178_p3, %p43_p0  ;;  %s2007_s30 = smov [#allocation5]  }
   0xd   : > { %s2422_s27 = scalar_select %p2092_p4, 1, 0 }
   0xe   : > { %s2423_s28 = scalar_select %p2097_p6, 1, 0 }
   0xf   : > { %p2102_p8 = pnand %p1601_p5, %p185_p7  ;;  %s203_s7 = sshll.u32 %s2007_s30, 4  ;;  %s204_s7 = int_to_ptr.vmem [resolvable:$true] %s203_s7 }
  0x10   : > { %s2008_s9 = smov [#allocation7]   ;;  %s1868_s11 = scalar_lea.vmem %s204_s7, 512 }
  0x11   : > { %s2424_s29 = scalar_select %p2102_p8, 1, 0 }
  0x12   : > { %p1758_p9 = pneg %p2102_p8  ;;  %s216_s10 = sshll.u32 %s2008_s9, 4  ;;  %s217_s10 = int_to_ptr.vmem [resolvable:$true] %s216_s10 }
  0x13   : > { %p1869_p13 = scmp.ne.s32.totalorder %s204_s7, %s1868_s11  ;;  %p1876_p5 = scmp.lt.s32.totalorder %s204_s7, %s204_s7 }
  0x14   : > { %p2111_p11 = pnand %p1758_p9, %p2417_p1  ;;  %p1877_p7 = scmp.lt.s32.totalorder %s1868_s11, %s1868_s11 }
  0x16   : > { %p1859_p12 = pneg %p2111_p11  ;;  %p1878_p10 = por %p1877_p7, %p1876_p5 }
  0x18   : > { %p1871_p0 = pnand %p1869_p13, %p1859_p12 }
  0x1a   : > { %p1872_p3 = pneg %p1871_p0 }
  0x1c   : > { %p1879_p9 = pnand %p1878_p10, %p1872_p3 }
  0x1e   : > { %1882 = shalt.err (!%p1879_p9)
}
  0x1f   : > { %s2009_s12 = smov 128   ;;  %s2010_s13 = smov 8  }
  0x20   : > { %s2426_s3 = sld [smem:[#allocation12_spill]]  ;;  %s1894_s16 = scalar_lea.vmem %s217_s10, 512 }
  0x21   : > { %p1895_p1 = scmp.ne.s32.totalorder %s217_s10, %s1894_s16  ;;  %p1902_p2 = scmp.lt.s32.totalorder %s217_s10, %s217_s10 }
  0x22   : > { %p1903_p6 = scmp.lt.s32.totalorder %s1894_s16, %s1894_s16 }
  0x23   : > { %p1897_p13 = pnand %p1895_p1, %p1859_p12 }
  0x24   : > { %p1904_p5 = por %p1903_p6, %p1902_p2 }
  0x25   : > { %p1898_p0 = pneg %p1897_p13 }
  0x26   : > { %1761 = dma.hbm_to_vmem [thread:$0]  (!%p2111_p11), %s2426_s3, 512, %s204_s7, [#allocation6], %s2009_s12, %s2009_s12, %s2010_s13  }
  0x27   : > { %p1905_p10 = pnand %p1904_p5, %p1898_p0 }
  0x29   : > { %1908 = shalt.err (!%p1905_p10)
}
  0x2a   : > { %s2011_s17 = smov 64   ;;  %s2012_s18 = smov 4  }
  0x2b   : > { %1764 = dma.hbm_to_vmem [thread:$0]  (!%p2111_p11), %s2414_s4, 512, %s217_s10, [#allocation6], %s2011_s17, %s2011_s17, %s2012_s18  }
  0x2c   : > { %s2134_s26 = sadd.s32 1, %s2005_s24   ;;  %s30_s7 = sadd.s32 1, %s2001_s23 }
  0x2d   : > { %s27_s30 = ssub.s32 %s2005_s24, %s2134_s26  ;;  %p37_p2 = scmp.ne.s32.totalorder %s2001_s23, %s1997_s22 }
  0x2e   : > { %p28_p1 = scmp.eq.s32.totalorder %s27_s30, 0  ;;  %p38_p6 = scmp.eq.s32.totalorder %s2005_s24, 0 }
  0x2f   : > { %p2427_p3 = scmp.eq.s32.totalorder %s2083_s25, 1  ;;  %p1775_p9 = scmp.lt.s32.totalorder %s2005_s24, 2 }
  0x30   : > { %s2143_s9 = scalar_select %p28_p1, %s2001_s23, %s30_s7  }
  0x31   : > { %p39_p12 = por %p38_p6, %p37_p2  ;;  %p2147_p7 = por %p2427_p3, %p37_p2 }
  0x32   : > { %s233_s8 = sand.u32 1, %s2001_s23   ;;  %s1606_s10 = sshll.u32 %s2005_s24, 7 }
  0x33   : > { %s2428_s11 = scalar_select %p2147_p7, 1, 0 }
  0x34   : > { %s1605_s12 = sshll.u32 %s233_s8, 3  ;;  %s2157_s15 = scalar_lea.hbm %s2410_s0, %s1606_s10 }
  0x35   : > { %s237_s16 = scalar_lea.vmem [#allocation2], %s1605_s12  ;;  %p2159_p11 = pnand %p1775_p9, %p39_p12 }
  0x36   : > { %s244_s17 = sshll.u32 %s237_s16, 4  ;;  %s234_s19 = scalar_lea.sflag [#allocation3], %s233_s8  ;;  %s245_s17 = int_to_ptr.vmem [resolvable:$true] %s244_s17 }
  0x37   : > { %s1909_s20 = scalar_lea.hbm %s2157_s15, 128  ;;  %p1911_p0 = pneg %p2159_p11 }
  0x38   : > { %p1910_p13 = scmp.ne.s32.totalorder %s2157_s15, %s1909_s20  ;;  %s1914_s10 = scalar_lea.hbm %s2410_s0, 256 }
  0x39   : > { %p1915_p1 = scmp.lt.s32.totalorder %s2157_s15, %s2410_s0  ;;  %p1916_p2 = scmp.lt.s32.totalorder %s1914_s10, %s1909_s20 }
  0x3a   : > { %p1912_p5 = pnand %p1911_p0, %p1910_p13 }
  0x3b   : > { %p1917_p6 = por %p1916_p2, %p1915_p1 }
  0x3c   : > { %p1913_p10 = pneg %p1912_p5 }
  0x3e   : > { %p1918_p12 = pnand %p1917_p6, %p1913_p10 }
  0x40   : > { %1921 = shalt.err (!%p1918_p12)
}
  0x41   : > { %s1922_s14 = scalar_lea.vmem %s245_s17, 128  ;;  %s2013_s8 = smov [#allocation2]  }
  0x42   : > { %p1923_p3 = scmp.ne.s32.totalorder %s245_s17, %s1922_s14  ;;  %s1927_s16 = sshll.u32 %s2013_s8, 4  ;;  %s1928_s16 = int_to_ptr.vmem [resolvable:$false] %s1927_s16 }
  0x43   : > { %s1929_s3 = scalar_lea.vmem %s1928_s16, 256  ;;  %p1930_p13 = scmp.lt.s32.totalorder %s245_s17, %s1928_s16 }
  0x44   : > { %p1925_p9 = pnand %p1923_p3, %p1911_p0  ;;  %p1931_p5 = scmp.lt.s32.totalorder %s1929_s3, %s1922_s14 }
  0x46   : > { %p1926_p7 = pneg %p1925_p9  ;;  %p1932_p4 = por %p1931_p5, %p1930_p13 }
  0x48   : > { %p1933_p8 = pnand %p1932_p4, %p1926_p7 }
  0x4a   : > { %1936 = shalt.err (!%p1933_p8)
}
  0x4b   : > { %1768 = dma.hbm_to_vmem [thread:$0]  (!%p2159_p11), %s2157_s15, 128, %s245_s17, %s234_s19  }
  0x4c   : > { %p2430_p10 = scmp.ne.s32.totalorder %s2424_s29, 0 }
  0x4d   : > { %s2180_s20 = sand.u32 (!%p2430_p10), 1, %s1997_s22   ;;  %p2431_p4 = scmp.ne.s32.totalorder (!%p2430_p10), %s2422_s27, 0 }
  0x4e   : > { %253 = sbr.rel (%p2430_p10) target bundleno = 1716 (0x6b4), region = 44  ;;  %s1608_s30 = sshll.u32 (!%p2430_p10), %s2180_s20, 3 }
  0x4f   : > { %s256_s7 = scalar_lea.sflag (!%p2430_p10), [#allocation3], %s2180_s20  ;;  %s259_s3 = scalar_lea.vmem (!%p2430_p10), [#allocation2], %s1608_s30 }
  0x53   : > { %1980 = dma.done.wait (%p2431_p4), %s256_s7, 128  }
  0x54   : > { %1982 = vsyncadd (%p2431_p4), %s256_s7, 4294967168  ;;  %p2432_p8 = scmp.eq.s32.totalorder %s2083_s25, 0 }
  0x56   : > { %1984 = dma.done.wait (%p2432_p8), [#allocation6], 1024   ;;  %p2433_p7 = pmov %p2432_p8 }
  0x57   : > { %vm298_vm0 = vcmask 261120   ;;  %v297_v0 = vld [vmem:[%s259_s3] sm:$0xff]  ;;  %v1832_v9 = vld [vmem:[#allocation5 + $0x4] ss:$8 sps:$4 sm:$0xff]   ;;  %v2014_v10 = vmov 0   ;;  %s2015_s18 = smov 32   ;;  %v435_v29 = vlaneseq }
  0x58   : > { %1986 = vsyncadd (%p2433_p7), [#allocation6], 4294966272  ;;  %v299_v1 = vsel %vm298_vm0, %v297_v0, 0.0  ;;  %v1829_v7 = vld [vmem:[#allocation5 + $0x14] ss:$8 sps:$4 sm:$0xff]   ;;  %389 = vmatprep.mubr.bf16.mxu0 %v2014_v10  ;;  %s2016_s19 = smov 64  }
  0x59   : > { %300 = vadd.xlane.f32.xlu0 %v299_v1  ;;  %v1831_v8 = vld [vmem:[#allocation5 + $0x10] ss:$8 sps:$4 sm:$0xff]   ;;  %369 = vmatprep.subr.bf16.mxu0 %v1829_v7  ;;  %v1834_v11 = vld [vmem:[#allocation5] ss:$8 sps:$4 sm:$0xff]   ;;  %s2017_s10 = smov 48   ;;  %s2018_s13 = smov 16  }
  0x5a   : > { %370 = vmatpush1.bf16.msra.mxu0 %v1831_v8  ;;  %v1612_v16 = vld [vmem:[%s2411_s1] ss:$0 sm:$0xff]  ;;  %s2019_s12 = smov 112   ;;  %s2020_s14 = smov 96   ;;  %v2021_v26 = vmov 0.0   ;;  %vm2023_vm1 = vmmov 0  }
  0x5b   : > { %371 = vmatprep.subr.bf16.mxu0 %v1832_v9  ;;  %v1613_v18 = vld [vmem:[%s2412_s2] ss:$0 sm:$0xff]  ;;  %1674 = vmatprep.subr.bf16.mxu1 %v2021_v26  ;;  %s2022_s8 = smov 80   ;;  %v2024_v27 = vmov 1983009808   ;;  %v436_v34 = vshrl.u32 %v435_v29, 7 }
  0x5c   : > { %1676 = vmatprep.mubr.msk.bf16.mxu1 %vm2023_vm1, %v2021_v26  ;;  %v433_v28 = vunpack.c.l.s4 %v2024_v27  ;;  %v2025_v31 = vmov 1934713408   ;;  %vm854_vm2 = vcmask 130048   ;;  %vm1039_vm3 = vcmask 64512   ;;  %s1647_s3 = sshll.u32 %s2083_s25, 7  ;;  %s295_s27 = scalar_lea.vmem [#allocation8], %s1608_s30 }
  0x5d   : > { %v497_v32 = vunpack.c.l.s4 %v2025_v31  ;;  %vm1091_vm4 = vcmask 1043456   ;;  %s1511_s29 = sshll.u32 %s295_s27, 4  ;;  %p2434_p0 = scmp.ne.s32.totalorder %s2428_s11, 0  ;;  %s1512_s29 = int_to_ptr.vmem [resolvable:$true] %s1511_s29 }
  0x5e   : > { %372 = vmatpush1.bf16.msra.mxu0 %v1834_v11  ;;  %v434_v33 = vunpack.c.0.s8 %v433_v28  ;;  %s2026_s25 = smov [#allocation8]  }
  0x5f   : > { %1680 = vmatprep.subr.bf16.mxu0 %v2021_v26  ;;  %v498_v37 = vunpack.c.0.s8 %v497_v32  ;;  %s1941_s30 = sshll.u32 %s2026_s25, 4  ;;  %s1942_s30 = int_to_ptr.vmem [resolvable:$false] %s1941_s30 }
  0x60   : > { %v2223_v38 = vsub.s32 %v434_v33, %v436_v34  ;;  %p1944_p6 = scmp.lt.s32.totalorder %s1512_s29, %s1942_s30 }
  0x61   : > { %v2225_v44 = vsub.s32 %v498_v37, %v436_v34 }
  0xe2   : > { %v301_v2 = vpop.xlane.xlu0 %300 }
  0xe3   : > { %v303_v3 = vmul.f32 0.03125, %v301_v2 }
  0xe5   : > { %v304_v4 = vsub.f32 %v297_v0, %v303_v3 }
  0xe7   : > { %v305_v5 = vmul.f32 %v304_v4, %v304_v4 }
  0xe9   : > { %v306_v6 = vsel %vm298_vm0, %v305_v5, 0.0 }
  0xea   : > { %307 = vadd.xlane.f32.xlu0 %v306_v6 }
 0x173   : > { %v308_v12 = vpop.xlane.xlu0 %307 }
 0x174   : > { %v309_v13 = vmul.f32 0.03125, %v308_v12 }
 0x176   : > { %v310_v14 = vadd.f32 1e-05, %v309_v13 }
 0x178   : > { %1839 = vrsqrt.f32 %v310_v14 }
 0x185   : > { %v1840_v15 = vpop.eup %1839 }
 0x186   : > { %v312_v17 = vmul.f32 %v1840_v15, %v304_v4 }
 0x188   : > { %v320_v19 = vmul.f32 %v1612_v16, %v312_v17 }
 0x18a   : > { %v328_v20 = vadd.f32 %v1613_v18, %v320_v19 }
 0x18c   : > { %v329_v21 = vpack.c.bf16 %v328_v20, %v328_v20 }
 0x18e   : > { %1618 = vmatmul.mubr.msk.bf16.vlgmr.msra.gmra.mxu0 %vm298_vm0, %v329_v21 }
 0x18f   : > { %1682 = vmatprep.mubr.msk.bf16.mxu0 %vm2023_vm1, %v2021_v26 }
 0x24e   : > { %v2203_v22 = vpop.f32.mrf.mxu0 }
 0x24f   : > { %414 = vrot.lane.b32.xlu0 %v2203_v22, %s2015_s18  ;;  %408 = vrot.lane.b32.xlu1 %v2203_v22, %s2016_s19  ;;  %s2372_s18 = scalar_lea.hbm %s2416_s6, %s1647_s3  ;;  %s1498_s19 = scalar_lea.sflag [#allocation4], %s2180_s20 }
 0x250   : > { %v2207_v23 = vpop.f32.mrf.mxu0 }
 0x252   : > { %v395_v24 = vpop.f32.mrf.mxu0 }
 0x253   : > { %411 = vrot.lane.b32.xlu1 %v2203_v22, %s2017_s10  ;;  %s1937_s10 = scalar_lea.vmem %s1512_s29, 128 }
 0x254   : > { %v396_v25 = vpop.f32.mrf.mxu0  ;;  %p1938_p11 = scmp.ne.s32.totalorder %s1512_s29, %s1937_s10 }
 0x256   : > { %p1939_p1 = pnand %p1938_p11, %p2434_p0 }
 0x257   : > { %417 = vrot.lane.b32.xlu1 %v2203_v22, %s2018_s13  ;;  %s1943_s13 = scalar_lea.vmem %s1942_s30, 256 }
 0x258   : > { %p1940_p2 = pneg %p1939_p1  ;;  %p1945_p12 = scmp.lt.s32.totalorder %s1943_s13, %s1937_s10 }
 0x25a   : > { %p1946_p3 = por %p1945_p12, %p1944_p6 }
 0x25b   : > { %399 = vrot.lane.b32.xlu1 %v2203_v22, %s2019_s12 }
 0x25c   : > { %p1947_p9 = pnand %p1946_p3, %p1940_p2 }
 0x25f   : > { %402 = vrot.lane.b32.xlu1 %v2203_v22, %s2020_s14 }
 0x263   : > { %405 = vrot.lane.b32.xlu1 %v2203_v22, %s2022_s8 }
 0x2c1   : > { %v409_v30 = vpop.permute.xlu1 %408  ;;  %v415_v35 = vpop.permute.xlu0 %414 }
 0x2c2   : > { %v462_v39 = vcombine.low %v409_v30, %v415_v35  ;;  %v463_v40 = vcombine.high %v409_v30, %v415_v35 }
 0x2c4   : > { %v470_v45 = vrot.slane %v462_v39, %v2223_v38  ;;  %v477_v46 = vrot.slane %v463_v40, %v2223_v38 }
 0x2c5   : > { %v412_v36 = vpop.permute.xlu1 %411 }
 0x2c9   : > { %v418_v41 = vpop.permute.xlu1 %417 }
 0x2ca   : > { %v478_v42 = vcombine.low %v412_v36, %v418_v41  ;;  %v479_v43 = vcombine.high %v412_v36, %v418_v41 }
 0x2cc   : > { %v486_v47 = vrot.slane %v478_v42, %v2223_v38  ;;  %v493_v48 = vrot.slane %v479_v43, %v2223_v38 }
 0x2cd   : > { %v400_v49 = vpop.permute.xlu1 %399 }
 0x2ce   : > { %v526_v50 = vcombine.low %v470_v45, %v486_v47  ;;  %v527_v51 = vcombine.high %v470_v45, %v486_v47  ;;  %v542_v52 = vcombine.low %v477_v46, %v493_v48  ;;  %v543_v53 = vcombine.high %v477_v46, %v493_v48 }
 0x2d0   : > { %v534_v54 = vrot.slane %v526_v50, %v2225_v44  ;;  %v541_v55 = vrot.slane %v527_v51, %v2225_v44  ;;  %v550_v56 = vrot.slane %v542_v52, %v2225_v44  ;;  %v557_v57 = vrot.slane %v543_v53, %v2225_v44 }
 0x2d1   : > { %v403_v58 = vpop.permute.xlu1 %402 }
 0x2d2   : > { %v1620_v59 = vcombine.low %v534_v54, %v541_v55  ;;  %v1622_v60 = vcombine.high %v534_v54, %v541_v55  ;;  %v1624_v61 = vcombine.low %v550_v56, %v557_v57  ;;  %v1626_v62 = vcombine.high %v550_v56, %v557_v57 }
 0x2d3   : > { %v430_v63 = vcombine.low %v2203_v22, %v403_v58  ;;  %v431_v0 = vcombine.high %v2203_v22, %v403_v58 }
 0x2d4   : > { %v649_v1 = vrot.slane %v1620_v59, %v2223_v38  ;;  %v665_v2 = vrot.slane %v1622_v60, %v2223_v38  ;;  %v681_v3 = vrot.slane %v1624_v61, %v2223_v38  ;;  %v697_v4 = vrot.slane %v1626_v62, %v2223_v38 }
 0x2d5   : > { %v406_v5 = vpop.permute.xlu1 %405  ;;  %v438_v10 = vrot.slane %v430_v63, %v2223_v38  ;;  %v445_v11 = vrot.slane %v431_v0, %v2223_v38 }
 0x2d6   : > { %v446_v6 = vcombine.low %v400_v49, %v406_v5  ;;  %v447_v7 = vcombine.high %v400_v49, %v406_v5  ;;  %v714_v8 = vcombine.low %v649_v1, %v665_v2  ;;  %v746_v9 = vcombine.low %v681_v3, %v697_v4 }
 0x2d7   : > { %v715_v22 = vcombine.high %v649_v1, %v665_v2  ;;  %v747_v24 = vcombine.high %v681_v3, %v697_v4 }
 0x2d8   : > { %v454_v12 = vrot.slane %v446_v6, %v2223_v38  ;;  %v461_v13 = vrot.slane %v447_v7, %v2223_v38  ;;  %v722_v14 = vrot.slane %v714_v8, %v2225_v44  ;;  %v754_v15 = vrot.slane %v746_v9, %v2225_v44 }
 0x2d9   : > { %v729_v39 = vrot.slane %v715_v22, %v2225_v44  ;;  %v761_v40 = vrot.slane %v747_v24, %v2225_v44 }
 0x2da   : > { %v494_v16 = vcombine.low %v438_v10, %v454_v12  ;;  %v495_v17 = vcombine.high %v438_v10, %v454_v12  ;;  %v510_v18 = vcombine.low %v445_v11, %v461_v13  ;;  %v511_v19 = vcombine.high %v445_v11, %v461_v13 }
 0x2db   : > { %v766_v20 = vcombine.low %v722_v14, %v754_v15  ;;  %v767_v21 = vcombine.high %v722_v14, %v754_v15  ;;  %v768_v52 = vcombine.low %v729_v39, %v761_v40  ;;  %v769_v53 = vcombine.high %v729_v39, %v761_v40 }
 0x2dc   : > { %v502_v25 = vrot.slane %v494_v16, %v2225_v44  ;;  %v509_v27 = vrot.slane %v495_v17, %v2225_v44  ;;  %v518_v28 = vrot.slane %v510_v18, %v2225_v44  ;;  %v525_v29 = vrot.slane %v511_v19, %v2225_v44 }
 0x2dd   : > { %v846_v30 = vpack.c.bf16 %v766_v20, %v766_v20  ;;  %v847_v31 = vpack.c.bf16 %v767_v21, %v767_v21  ;;  %v848_v60 = vpack.c.bf16 %v768_v52, %v768_v52  ;;  %v849_v61 = vpack.c.bf16 %v769_v53, %v769_v53 }
 0x2de   : > { %v1619_v32 = vcombine.low %v502_v25, %v509_v27  ;;  %v1621_v33 = vcombine.high %v502_v25, %v509_v27  ;;  %v1623_v34 = vcombine.low %v518_v28, %v525_v29  ;;  %v1625_v35 = vcombine.high %v518_v28, %v525_v29 }
 0x2df   : > { %v859_v36 = vsel %vm854_vm2, %v846_v30, 0  ;;  %v905_v37 = vsel %vm854_vm2, %v847_v31, 0  ;;  %v951_v2 = vsel %vm854_vm2, %v848_v60, 0  ;;  %v997_v3 = vsel %vm854_vm2, %v849_v61, 0 }
 0x2e0   : > { %v642_v41 = vrot.slane %v1619_v32, %v2223_v38  ;;  %v658_v42 = vrot.slane %v1621_v33, %v2223_v38  ;;  %v674_v43 = vrot.slane %v1623_v34, %v2223_v38  ;;  %v690_v45 = vrot.slane %v1625_v35, %v2223_v38  ;;  %1675 = vmatpush3.bf16.xpose.msra.mxu1 %v859_v36 }
 0x2e1   : > { %1681 = vmatpush3.bf16.xpose.msra.mxu0 %v905_v37  ;;  %1686 = vmatprep.subr.bf16.mxu1 %v2021_v26 }
 0x2e2   : > { %v699_v46 = vcombine.high %v642_v41, %v658_v42  ;;  %v731_v47 = vcombine.high %v674_v43, %v690_v45  ;;  %1692 = vmatprep.subr.bf16.mxu0 %v2021_v26  ;;  %v698_v48 = vcombine.low %v642_v41, %v658_v42  ;;  %v730_v49 = vcombine.low %v674_v43, %v690_v45 }
 0x2e4   : > { %v706_v50 = vrot.slane %v698_v48, %v2225_v44  ;;  %v738_v51 = vrot.slane %v730_v49, %v2225_v44  ;;  %v713_v56 = vrot.slane %v699_v46, %v2225_v44  ;;  %v745_v57 = vrot.slane %v731_v47, %v2225_v44 }
 0x2e6   : > { %v762_v54 = vcombine.low %v706_v50, %v738_v51  ;;  %v763_v55 = vcombine.high %v706_v50, %v738_v51  ;;  %v764_v0 = vcombine.low %v713_v56, %v745_v57  ;;  %v765_v1 = vcombine.high %v713_v56, %v745_v57 }
 0x2e8   : > { %v838_v58 = vmul.f32 0.25, %v762_v54  ;;  %v839_v59 = vmul.f32 0.25, %v763_v55  ;;  %v840_v4 = vmul.f32 0.25, %v764_v0  ;;  %v841_v5 = vmul.f32 0.25, %v765_v1 }
 0x2ea   : > { %v842_v62 = vpack.c.bf16 %v838_v58, %v838_v58  ;;  %v843_v63 = vpack.c.bf16 %v839_v59, %v839_v59  ;;  %v844_v6 = vpack.c.bf16 %v840_v4, %v840_v4  ;;  %v845_v7 = vpack.c.bf16 %v841_v5, %v841_v5 }
 0x2ec   : > { %1677 = vmatmul.mubr.msk.bf16.vlgmr.msra.gmra.mxu1 %vm854_vm2, %v842_v62  ;;  %1683 = vmatmul.mubr.msk.bf16.vlgmr.msra.gmra.mxu0 %vm854_vm2, %v843_v63 }
 0x2ed   : > { %1687 = vmatpush3.bf16.xpose.msra.mxu1 %v951_v2  ;;  %1693 = vmatpush3.bf16.xpose.msra.mxu0 %v997_v3 }
 0x2ee   : > { %1688 = vmatprep.mubr.msk.bf16.mxu1 %vm2023_vm1, %v2021_v26  ;;  %1694 = vmatprep.mubr.msk.bf16.mxu0 %vm2023_vm1, %v2021_v26 }
 0x2ef   : > { %1698 = vmatprep.subr.bf16.mxu1 %v2021_v26  ;;  %1704 = vmatprep.subr.bf16.mxu0 %v2021_v26 }
 0x2f4   : > { %1689 = vmatmul.mubr.msk.bf16.vlgmr.msra.gmra.mxu1 %vm854_vm2, %v844_v6  ;;  %1695 = vmatmul.mubr.msk.bf16.vlgmr.msra.gmra.mxu0 %vm854_vm2, %v845_v7 }
 0x2f5   : > { %1700 = vmatprep.mubr.msk.bf16.mxu1 %vm2023_vm1, %v2021_v26  ;;  %1706 = vmatprep.mubr.msk.bf16.mxu0 %vm2023_vm1, %v2021_v26 }
 0x3ac   : > { %v895_v8 = vpop.f32.mrf.mxu1  ;;  %v941_v9 = vpop.f32.mrf.mxu0 }
 0x3ad   : > { %v1040_v10 = vsel %vm1039_vm3, %v895_v8, -inf  ;;  %v1043_v11 = vsel %vm1039_vm3, %v941_v9, -inf }
 0x3ae   : > { %1041 = vmax.xlane.f32.xlu1 %v1040_v10  ;;  %v1678_v12 = vpop.f32.mrf.mxu1  ;;  %1044 = vmax.xlane.f32.xlu0 %v1043_v11  ;;  %v1684_v13 = vpop.f32.mrf.mxu0 }
 0x3b0   : > { %v898_v14 = vpop.f32.mrf.mxu1  ;;  %v944_v15 = vpop.f32.mrf.mxu0 }
 0x3b2   : > { %v1679_v16 = vpop.f32.mrf.mxu1  ;;  %v1685_v17 = vpop.f32.mrf.mxu0 }
 0x3b4   : > { %v987_v18 = vpop.f32.mrf.mxu1  ;;  %v1033_v19 = vpop.f32.mrf.mxu0 }
 0x3b5   : > { %v1046_v20 = vsel %vm1039_vm3, %v987_v18, -inf  ;;  %v1049_v21 = vsel %vm1039_vm3, %v1033_v19, -inf }
 0x3b6   : > { %1047 = vmax.xlane.f32.xlu1 %v1046_v20  ;;  %v1690_v22 = vpop.f32.mrf.mxu1  ;;  %1050 = vmax.xlane.f32.xlu0 %v1049_v21  ;;  %v1696_v24 = vpop.f32.mrf.mxu0 }
 0x3b8   : > { %v990_v25 = vpop.f32.mrf.mxu1  ;;  %v1036_v27 = vpop.f32.mrf.mxu0 }
 0x3ba   : > { %v1691_v28 = vpop.f32.mrf.mxu1  ;;  %v1697_v29 = vpop.f32.mrf.mxu0 }
 0x3c7   : > { %421 = vrot.lane.b32.xlu1 %v2207_v23, %s2019_s12 }
 0x437   : > { %v1042_v30 = vpop.xlane.xlu1 %1041  ;;  %v1045_v31 = vpop.xlane.xlu0 %1044 }
 0x438   : > { %v1052_v32 = vsub.f32 %v895_v8, %v1042_v30  ;;  %v1053_v33 = vsub.f32 %v941_v9, %v1045_v31 }
 0x43a   : > { %v1056_v34 = vmul.f32 1.442695, %v1052_v32  ;;  %v1058_v35 = vmul.f32 1.442695, %v1053_v33 }
 0x43c   : > { %1841 = vpow2.f32 %v1056_v34 }
 0x43d   : > { %1843 = vpow2.f32 %v1058_v35 }
 0x43f   : > { %v1048_v41 = vpop.xlane.xlu1 %1047  ;;  %v1051_v42 = vpop.xlane.xlu0 %1050 }
 0x440   : > { %v1054_v43 = vsub.f32 %v987_v18, %v1048_v41  ;;  %v1055_v45 = vsub.f32 %v1033_v19, %v1051_v42 }
 0x442   : > { %v1060_v46 = vmul.f32 1.442695, %v1054_v43  ;;  %v1062_v47 = vmul.f32 1.442695, %v1055_v45 }
 0x443   : > { %v422_v52 = vpop.permute.xlu1 %421 }
 0x444   : > { %1845 = vpow2.f32 %v1060_v46 }
 0x445   : > { %1847 = vpow2.f32 %v1062_v47 }
 0x449   : > { %v2287_v36 = vpop.eup %1841 }
 0x44a   : > { %v2289_v37 = vpop.eup %1843  ;;  %v1064_v39 = vsel %vm1039_vm3, %v2287_v36, 0.0 }
 0x44b   : > { %1065 = vadd.xlane.f32.xlu1 %v1064_v39  ;;  %v1067_v40 = vsel %vm1039_vm3, %v2289_v37, 0.0 }
 0x44c   : > { %1068 = vadd.xlane.f32.xlu0 %v1067_v40 }
 0x451   : > { %v2299_v48 = vpop.eup %1845 }
 0x452   : > { %v2301_v49 = vpop.eup %1847  ;;  %v1070_v50 = vsel %vm1039_vm3, %v2299_v48, 0.0 }
 0x453   : > { %v1073_v51 = vsel %vm1039_vm3, %v2301_v49, 0.0 }
 0x45c   : > { %427 = vrot.lane.b32.xlu1 %v2207_v23, %s2022_s8 }
 0x462   : > { %424 = vrot.lane.b32.xlu0 %v2207_v23, %s2020_s14 }
 0x480   : > { %1071 = vadd.xlane.f32.xlu1 %v1070_v50 }
 0x481   : > { %1074 = vadd.xlane.f32.xlu0 %v1073_v51 }
 0x4d4   : > { %v1066_v53 = vpop.xlane.xlu1 %1065 }
 0x4d5   : > { %v1069_v54 = vpop.xlane.xlu0 %1068  ;;  %1849 = vrcp.f32 %v1066_v53 }
 0x4d6   : > { %1851 = vrcp.f32 %v1069_v54  ;;  %v1835_v54 = vld [vmem:[#allocation7] sm:$0xff]  }
 0x4d8   : > { %v428_v55 = vpop.permute.xlu1 %427 }
 0x4d9   : > { %v582_v56 = vcombine.low %v422_v52, %v428_v55  ;;  %v583_v57 = vcombine.high %v422_v52, %v428_v55  ;;  %v425_v58 = vpop.permute.xlu0 %424  ;;  %v1836_v55 = vld [vmem:[#allocation7 + $0x8] sm:$0xff]  }
 0x4da   : > { %v566_v59 = vcombine.low %v2207_v23, %v425_v58  ;;  %v567_v60 = vcombine.high %v2207_v23, %v425_v58 }
 0x4db   : > { %v590_v61 = vrot.slane %v582_v56, %v2223_v38  ;;  %v597_v62 = vrot.slane %v583_v57, %v2223_v38  ;;  %v1837_v56 = vld [vmem:[#allocation7 + $0x10] sm:$0xff]   ;;  %v1838_v57 = vld [vmem:[#allocation7 + $0x18] sm:$0xff]  }
 0x4dc   : > { %v574_v63 = vrot.slane %v566_v59, %v2223_v38  ;;  %v581_v0 = vrot.slane %v567_v60, %v2223_v38 }
 0x4de   : > { %v598_v1 = vcombine.low %v574_v63, %v590_v61  ;;  %v599_v2 = vcombine.high %v574_v63, %v590_v61  ;;  %v614_v3 = vcombine.low %v581_v0, %v597_v62  ;;  %v615_v4 = vcombine.high %v581_v0, %v597_v62 }
 0x4e0   : > { %v606_v5 = vrot.slane %v598_v1, %v2225_v44  ;;  %v613_v6 = vrot.slane %v599_v2, %v2225_v44  ;;  %v622_v23 = vrot.slane %v614_v3, %v2225_v44  ;;  %v629_v7 = vrot.slane %v615_v4, %v2225_v44 }
 0x4e2   : > { %v770_v8 = vcombine.low %v606_v5, %v613_v6  ;;  %v1627_v9 = vcombine.high %v606_v5, %v613_v6  ;;  %v786_v10 = vcombine.low %v622_v23, %v629_v7  ;;  %v1628_v11 = vcombine.high %v622_v23, %v629_v7  ;;  %v1850_v20 = vpop.eup %1849 }
 0x4e3   : > { %v1852_v27 = vpop.eup %1851  ;;  %v1080_v33 = vmul.f32 %v1850_v20, %v2287_v36 }
 0x4e4   : > { %v777_v12 = vrot.slane %v770_v8, %v2223_v38  ;;  %v785_v13 = vrot.slane %v1627_v9, %v2223_v38  ;;  %v793_v14 = vrot.slane %v786_v10, %v2223_v38  ;;  %v801_v15 = vrot.slane %v1628_v11, %v2223_v38 }
 0x4e5   : > { %v1081_v34 = vmul.f32 %v1852_v27, %v2289_v37 }
 0x4e6   : > { %v802_v16 = vcombine.low %v777_v12, %v785_v13  ;;  %v818_v17 = vcombine.low %v793_v14, %v801_v15  ;;  %v803_v18 = vcombine.high %v777_v12, %v785_v13  ;;  %v819_v19 = vcombine.high %v793_v14, %v801_v15 }
 0x4e7   : > { %v1085_v42 = vpack.c.bf16 %v1081_v34, %v1081_v34 }
 0x4e8   : > { %v810_v21 = vrot.slane %v802_v16, %v2225_v44  ;;  %v826_v22 = vrot.slane %v818_v17, %v2225_v44  ;;  %v817_v24 = vrot.slane %v803_v18, %v2225_v44  ;;  %v833_v25 = vrot.slane %v819_v19, %v2225_v44 }
 0x4e9   : > { %v1084_v44 = vpack.c.bf16 %v1080_v33, %v1080_v33 }
 0x4ea   : > { %v834_v28 = vcombine.low %v810_v21, %v826_v22  ;;  %v835_v29 = vcombine.high %v810_v21, %v826_v22  ;;  %v836_v30 = vcombine.low %v817_v24, %v833_v25  ;;  %v837_v31 = vcombine.high %v817_v24, %v833_v25 }
 0x4ec   : > { %v850_v38 = vpack.c.bf16 %v834_v28, %v834_v28  ;;  %v851_v32 = vpack.c.bf16 %v835_v29, %v835_v29  ;;  %v852_v40 = vpack.c.bf16 %v836_v30, %v836_v30  ;;  %v853_v41 = vpack.c.bf16 %v837_v31, %v837_v31  ;;  %v1645_v29 = vld [vmem:[%s2415_s5] ss:$0 sm:$0xff] }
 0x4ee   : > { %v1093_v35 = vsel %vm1091_vm4, %v850_v38, 0  ;;  %v1139_v39 = vsel %vm1091_vm4, %v851_v32, 0  ;;  %v1185_v36 = vsel %vm1091_vm4, %v852_v40, 0  ;;  %v1231_v37 = vsel %vm1091_vm4, %v853_v41, 0 }
 0x4ef   : > { %1699 = vmatpush3.bf16.msra.mxu1 %v1093_v35  ;;  %1705 = vmatpush3.bf16.msra.mxu0 %v1139_v39 }
 0x4f0   : > { %1710 = vmatprep.subr.bf16.mxu1 %v2021_v26  ;;  %1716 = vmatprep.subr.bf16.mxu0 %v2021_v26 }
 0x4f2   : > { %1701 = vmatmul.mubr.msk.bf16.vlgmr.msra.gmra.mxu1 %vm1039_vm3, %v1084_v44  ;;  %1707 = vmatmul.mubr.msk.bf16.vlgmr.msra.gmra.mxu0 %vm1039_vm3, %v1085_v42 }
 0x4f3   : > { %1711 = vmatpush3.bf16.msra.mxu1 %v1185_v36  ;;  %1717 = vmatpush3.bf16.msra.mxu0 %v1231_v37 }
 0x4f4   : > { %1712 = vmatprep.mubr.msk.bf16.mxu1 %vm2023_vm1, %v2021_v26  ;;  %1718 = vmatprep.mubr.msk.bf16.mxu0 %vm2023_vm1, %v2021_v26 }
 0x4f5   : > { %1722 = vmatprep.subr.bf16.mxu1 %v2021_v26  ;;  %1728 = vmatprep.subr.bf16.mxu0 %v2021_v26 }
 0x509   : > { %v1072_v43 = vpop.xlane.xlu1 %1071 }
 0x50a   : > { %1853 = vrcp.f32 %v1072_v43  ;;  %v1075_v45 = vpop.xlane.xlu0 %1074 }
 0x50b   : > { %1855 = vrcp.f32 %v1075_v45 }
 0x517   : > { %v1854_v46 = vpop.eup %1853 }
 0x518   : > { %v1856_v47 = vpop.eup %1855  ;;  %v1082_v50 = vmul.f32 %v1854_v46, %v2299_v48 }
 0x519   : > { %v1083_v51 = vmul.f32 %v1856_v47, %v2301_v49 }
 0x51a   : > { %v1086_v52 = vpack.c.bf16 %v1082_v50, %v1082_v50 }
 0x51b   : > { %v1087_v53 = vpack.c.bf16 %v1083_v51, %v1083_v51 }
 0x51c   : > { %1713 = vmatmul.mubr.msk.bf16.vlgmr.msra.gmra.mxu1 %vm1039_vm3, %v1086_v52 }
 0x51d   : > { %1719 = vmatmul.mubr.msk.bf16.vlgmr.msra.gmra.mxu0 %vm1039_vm3, %v1087_v53  ;;  %1724 = vmatprep.mubr.msk.bf16.mxu1 %vm2023_vm1, %v2021_v26 }
 0x51e   : > { %1730 = vmatprep.mubr.msk.bf16.mxu0 %vm2023_vm1, %v2021_v26  ;;  %1723 = vmatpush3.bf16.msra.mxu1 %v1835_v54 }
 0x51f   : > { %1729 = vmatpush3.bf16.msra.mxu0 %v1836_v55  ;;  %1734 = vmatprep.subr.bf16.mxu1 %v2021_v26 }
 0x520   : > { %1740 = vmatprep.subr.bf16.mxu0 %v2021_v26 }
 0x5b2   : > { %v1129_v48 = vpop.f32.mrf.mxu1  ;;  %v1175_v49 = vpop.f32.mrf.mxu0 }
 0x5b3   : > { %v1273_v58 = vpack.c.bf16 %v1129_v48, %v1129_v48  ;;  %v1274_v59 = vpack.c.bf16 %v1175_v49, %v1175_v49 }
 0x5b4   : > { %v1702_v60 = vpop.f32.mrf.mxu1  ;;  %v1708_v61 = vpop.f32.mrf.mxu0 }
 0x5b5   : > { %1725 = vmatmul.mubr.msk.bf16.vlgmr.msra.gmra.mxu1 %vm854_vm2, %v1273_v58  ;;  %1731 = vmatmul.mubr.msk.bf16.vlgmr.msra.gmra.mxu0 %vm854_vm2, %v1274_v59 }
 0x5b6   : > { %v1132_v62 = vpop.f32.mrf.mxu1  ;;  %v1178_v63 = vpop.f32.mrf.mxu0  ;;  %1735 = vmatpush3.bf16.msra.mxu1 %v1837_v56  ;;  %1741 = vmatpush3.bf16.msra.mxu0 %v1838_v57 }
 0x5b7   : > { %1736 = vmatprep.mubr.msk.bf16.mxu1 %vm2023_vm1, %v2021_v26  ;;  %1742 = vmatprep.mubr.msk.bf16.mxu0 %vm2023_vm1, %v2021_v26 }
 0x5b8   : > { %v1703_v0 = vpop.f32.mrf.mxu1  ;;  %v1709_v1 = vpop.f32.mrf.mxu0 }
 0x5dc   : > { %v1221_v2 = vpop.f32.mrf.mxu1 }
 0x5dd   : > { %v1275_v3 = vpack.c.bf16 %v1221_v2, %v1221_v2  ;;  %v1267_v4 = vpop.f32.mrf.mxu0 }
 0x5de   : > { %v1276_v5 = vpack.c.bf16 %v1267_v4, %v1267_v4  ;;  %v1714_v6 = vpop.f32.mrf.mxu1 }
 0x5df   : > { %v1720_v23 = vpop.f32.mrf.mxu0  ;;  %1737 = vmatmul.mubr.msk.bf16.vlgmr.msra.gmra.mxu1 %vm854_vm2, %v1275_v3 }
 0x5e0   : > { %1743 = vmatmul.mubr.msk.bf16.vlgmr.msra.gmra.mxu0 %vm854_vm2, %v1276_v5  ;;  %v1224_v7 = vpop.f32.mrf.mxu1 }
 0x5e1   : > { %v1270_v8 = vpop.f32.mrf.mxu0 }
 0x5e2   : > { %v1715_v9 = vpop.f32.mrf.mxu1 }
 0x5e3   : > { %v1721_v10 = vpop.f32.mrf.mxu0 }
 0x675   : > { %v1328_v11 = vpop.f32.mrf.mxu1  ;;  %v1377_v12 = vpop.f32.mrf.mxu0 }
 0x676   : > { %v1481_v18 = vsel %vm298_vm0, %v1328_v11, 0.0  ;;  %v1482_v19 = vsel %vm298_vm0, %v1377_v12, 0.0 }
 0x677   : > { %v1726_v13 = vpop.f32.mrf.mxu1  ;;  %v1732_v26 = vpop.f32.mrf.mxu0  ;;  %v1483_v20 = vadd.f32 %v1482_v19, %v1481_v18 }
 0x679   : > { %v1331_v14 = vpop.f32.mrf.mxu1  ;;  %v1380_v15 = vpop.f32.mrf.mxu0 }
 0x67b   : > { %v1727_v16 = vpop.f32.mrf.mxu1  ;;  %v1733_v17 = vpop.f32.mrf.mxu0 }
 0x69f   : > { %v1426_v21 = vpop.f32.mrf.mxu1 }
 0x6a0   : > { %v1484_v22 = vsel %vm298_vm0, %v1426_v21, 0.0  ;;  %v1475_v24 = vpop.f32.mrf.mxu0 }
 0x6a1   : > { %v1485_v25 = vadd.f32 %v1484_v22, %v1483_v20  ;;  %v1738_v27 = vpop.f32.mrf.mxu1  ;;  %v1486_v28 = vsel %vm298_vm0, %v1475_v24, 0.0 }
 0x6a2   : > { %v1744_v30 = vpop.f32.mrf.mxu0 }
 0x6a3   : > { %v1487_v31 = vadd.f32 %v1486_v28, %v1485_v25  ;;  %v1429_v38 = vpop.f32.mrf.mxu1 }
 0x6a4   : > { %v1478_v32 = vpop.f32.mrf.mxu0 }
 0x6a5   : > { %v1495_v33 = vadd.f32 %v1645_v29, %v1487_v31  ;;  %v1739_v34 = vpop.f32.mrf.mxu1 }
 0x6a6   : > { %v1745_v35 = vpop.f32.mrf.mxu0 }
 0x6a7   : > { %1496 = vst.msk [vmem:[%s295_s27] sm:$0xff] %vm298_vm0, %v1495_v33 }
 0x6a8   : > { %1950 = shalt.err (!%p1947_p9)
}
 0x6a9   : > { %s1951_s12 = scalar_lea.hbm %s2372_s18, 128  ;;  %s1955_s8 = scalar_lea.hbm %s2416_s6, 256 }
 0x6aa   : > { %p1952_p13 = scmp.ne.s32.totalorder %s2372_s18, %s1951_s12  ;;  %p1956_p4 = scmp.lt.s32.totalorder %s2372_s18, %s2416_s6 }
 0x6ab   : > { %p1957_p8 = scmp.lt.s32.totalorder %s1955_s8, %s1951_s12 }
 0x6ac   : > { %p1953_p5 = pnand %p1952_p13, %p2434_p0 }
 0x6ad   : > { %p1958_p7 = por %p1957_p8, %p1956_p4 }
 0x6ae   : > { %p1954_p10 = pneg %p1953_p5 }
 0x6b0   : > { %p1959_p11 = pnand %p1958_p7, %p1954_p10 }
 0x6b2   : > { %1962 = shalt.err (!%p1959_p11)
}
 0x6b3   : > { %1756 = dma.vmem_to_hbm [thread:$0]  (%p2434_p0), %s1512_s29, 128, %s2372_s18, %s1498_s19  }
 0x6b4 PF: > { %s1523_s3 = sand.u32 1, %s1993_s21   ;;  %p2435_p1 = scmp.ne.s32.totalorder %s2423_s28, 0 }
 0x6b5   : > { %p2436_p2 = scmp.ge.s32.totalorder %s2005_s24, 2  ;;  %s1524_s27 = scalar_lea.sflag [#allocation4], %s1523_s3 }
 0x6b7   : > { %p1770_p6 = pnand %p2436_p2, %p2435_p1 }
 0x6b9   : > { %p1771_p12 = pneg %p1770_p6 }
 0x6bb   : > { %1988 = dma.done.wait (%p1771_p12), %s1524_s27, 128  }
 0x6bc   : > { %1990 = vsyncadd (%p1771_p12), %s1524_s27, 4294967168  ;;  %p20_p3 = scmp.ge.s32.totalorder %s2134_s26, 4   ;;  %s2437_s21 = smov %s1997_s22 }
 0x6bd   : > { %s2438_s22 = smov %s2001_s23  ;;  %s2439_s23 = smov %s2143_s9 }
 0x6be   : > { %s2440_s24 = smov %s2134_s26  ;;  %22 = sbr.rel (!%p20_p3) target bundleno = 8 (0x8), region = 97 }
 0x6c3   :  { %1529 = vsyncpa [#allocation3], 1 }
 0x6c4   :  { %1531 = vsyncpa [#allocation3 + $0x1], 1 }
 0x6c5   :  { %1532 = vsyncpa [#allocation6], 1 }
 0x6c6   :  { %1533 = vsyncpa [#allocation4], 1 }
 0x6c7   :  { %1535 = vsyncpa [#allocation4 + $0x1], 1 }

</bundles_post_ra>
